<compile_context>
chip_gen: v5e
topology: v5e:2x2
jax: 0.10.0
libtpu: 0.0.40
codegen_flags: <defaults>
</compile_context>

<pallas_src>
import jax
import jax.numpy as jnp
from jax.experimental import pallas as pl
from jax.experimental.pallas import tpu as pltpu


def _normalize_kernel(x_ref, scale_ref, bias_ref, o_ref):
    # x_ref: (rows_tile, lane_tile); scale/bias: (rows_tile, 1) f32, broadcast
    # across lanes. Compute in f32, cast only the result.
    x = x_ref[...].astype(jnp.float32)
    o_ref[...] = (x * scale_ref[...] + bias_ref[...]).astype(o_ref.dtype)


def _choose_tiles(rows: int, hw: int, dtype_bytes: int,
                  target_bytes: int = 1 << 20):
    """Pick (rows_tile, lane_tile) so one block is ~target_bytes and respects
    the (8, 128) tiling constraint (multiple-of or full-extent)."""
    # Lane tile: keep the full flattened spatial extent when modest; otherwise
    # chunk it in multiples of 128 lanes (only when H*W is 128-aligned).
    if hw * dtype_bytes <= target_bytes or hw % 128 != 0:
        lane_tile = hw
    else:
        lane_tile = min(hw, max(128, (target_bytes // dtype_bytes // 128) * 128))

    rows_per_block = max(1, target_bytes // (lane_tile * dtype_bytes))
    if rows_per_block >= rows:
        rows_tile = rows                       # full extent: always legal
    else:
        rows_tile = min(rows, max(8, (rows_per_block // 8) * 8))
    return rows_tile, lane_tile


def normalize_layer(x: jax.Array, means, sds) -> jax.Array:
    """Standardize channels of an NCHW batch: (x - means[c]) / sds[c]."""
    B, C, H, W = x.shape
    rows, hw = B * C, H * W

    # Keep constants in float32 regardless of x.dtype; fold the division.
    means_f = jnp.asarray(means, dtype=jnp.float32)
    sds_f = jnp.asarray(sds, dtype=jnp.float32)
    scale = 1.0 / sds_f                 # (C,)
    bias = -means_f * scale             # (C,)
    # Row r of the flattened (B*C, H*W) view has channel r % C.
    scale_rows = jnp.tile(scale, (B,)).reshape(rows, 1)
    bias_rows = jnp.tile(bias, (B,)).reshape(rows, 1)

    x2d = x.reshape(rows, hw)           # contiguous reshape, no data movement
    dtype_bytes = jnp.dtype(x.dtype).itemsize
    rows_tile, lane_tile = _choose_tiles(rows, hw, dtype_bytes)
    grid = (pl.cdiv(rows, rows_tile), pl.cdiv(hw, lane_tile))

    out2d = pl.pallas_call(
        _normalize_kernel,
        out_shape=jax.ShapeDtypeStruct((rows, hw), x.dtype),
        grid=grid,
        in_specs=[
            pl.BlockSpec((rows_tile, lane_tile), lambda r, l: (r, l)),
            pl.BlockSpec((rows_tile, 1), lambda r, l: (r, 0)),
            pl.BlockSpec((rows_tile, 1), lambda r, l: (r, 0)),
        ],
        out_specs=pl.BlockSpec((rows_tile, lane_tile), lambda r, l: (r, l)),
        compiler_params=pltpu.CompilerParams(
            dimension_semantics=("parallel", "parallel"),
            vmem_limit_bytes=32 * 1024 * 1024,
        ),
    )(x2d, scale_rows, bias_rows)

    return out2d.reshape(B, C, H, W)


if __name__ == "__main__":
    key = jax.random.PRNGKey(0)
    B, C, H, W = 2, 4, 16, 16

    x = jax.random.normal(key, (B, C, H, W), dtype=jnp.float32)
    # Deterministic "dataset" channel means / stds (len == C, as in __init__).
    means = jnp.array([0.485, 0.456, 0.406, 0.5], dtype=jnp.float32)
    sds = jnp.array([0.229, 0.224, 0.225, 0.25], dtype=jnp.float32)

    out = normalize_layer(x, means, sds)
    out = jax.block_until_ready(out)

    # Reference (plain JAX, mirrors the PyTorch broadcasting semantics).
    ref = (x - means[None, :, None, None]) / sds[None, :, None, None]
    assert out.shape == (B, C, H, W)
    assert jnp.allclose(out, ref, atol=1e-5, rtol=1e-5), "mismatch vs reference"

    print("KERNEL_OK")
</pallas_src>

<mosaic_0001>
module attributes {stable_mosaic.version = 11 : i64} {
  func.func @_normalize_kernel(%arg0: i32, %arg1: i32, %arg2: memref<8x256xf32, #tpu.memory_space<vmem>>, %arg3: memref<8x1xf32, #tpu.memory_space<vmem>>, %arg4: memref<8x1xf32, #tpu.memory_space<vmem>>, %arg5: memref<8x256xf32, #tpu.memory_space<vmem>>) attributes {dimension_semantics = [#tpu.dimension_semantics<parallel>, #tpu.dimension_semantics<parallel>], iteration_bounds = array<i64: 1, 1>, scalar_prefetch = 0 : i64, scratch_operands = 0 : i64, tpu.core_type = #tpu.core_type<tc>, window_params = [{transform_indices = @transform_0, window_bounds = array<i64: 8, 256>}, {transform_indices = @transform_1, window_bounds = array<i64: 8, 1>}, {transform_indices = @transform_2, window_bounds = array<i64: 8, 1>}, {transform_indices = @transform_3, window_bounds = array<i64: 8, 256>}]} {
    %c0 = arith.constant 0 : index
    %c0_0 = arith.constant 0 : index
    %0 = vector.load %arg2[%c0, %c0_0] : memref<8x256xf32, #tpu.memory_space<vmem>>, vector<8x256xf32>
    %c0_1 = arith.constant 0 : index
    %c0_2 = arith.constant 0 : index
    %1 = vector.load %arg3[%c0_1, %c0_2] : memref<8x1xf32, #tpu.memory_space<vmem>>, vector<8x1xf32>
    %2 = vector.broadcast %1 : vector<8x1xf32> to vector<8x256xf32>
    %3 = arith.mulf %0, %2 : vector<8x256xf32>
    %c0_3 = arith.constant 0 : index
    %c0_4 = arith.constant 0 : index
    %4 = vector.load %arg4[%c0_3, %c0_4] : memref<8x1xf32, #tpu.memory_space<vmem>>, vector<8x1xf32>
    %5 = vector.broadcast %4 : vector<8x1xf32> to vector<8x256xf32>
    %6 = arith.addf %3, %5 : vector<8x256xf32>
    %c0_5 = arith.constant 0 : index
    %c0_6 = arith.constant 0 : index
    %7 = vector.load %arg5[%c0_5, %c0_6] : memref<8x256xf32, #tpu.memory_space<vmem>>, vector<8x256xf32>
    tpu.vector_store %arg5[%c0_5, %c0_6], %6 {strides = array<i32>} : memref<8x256xf32, #tpu.memory_space<vmem>>, vector<8x256xf32>,
    return
  }
  func.func @transform_0(%arg0: i32, %arg1: i32) -> (i32, i32) {
    %c0_i32 = arith.constant 0 : i32
    return %arg0, %arg1 : i32, i32
  }
  func.func @transform_1(%arg0: i32, %arg1: i32) -> (i32, i32) {
    %c0_i32 = arith.constant 0 : i32
    %c0_i32_0 = arith.constant 0 : i32
    return %arg0, %c0_i32 : i32, i32
  }
  func.func @transform_2(%arg0: i32, %arg1: i32) -> (i32, i32) {
    %c0_i32 = arith.constant 0 : i32
    %c0_i32_0 = arith.constant 0 : i32
    return %arg0, %c0_i32 : i32, i32
  }
  func.func @transform_3(%arg0: i32, %arg1: i32) -> (i32, i32) {
    %c0_i32 = arith.constant 0 : i32
    return %arg0, %arg1 : i32, i32
  }
}

</mosaic_0001>

<bundles_post_ra>
// kernel: tpu_custom_call.1
= control target key start
LH: loop header
LB: loop body
LE: loop exit
PB: predicated region body
PF: predicated region fallthrough
CT: control target
= control target key end

     0   :  { %s117_s0 = inlined_call_operand.vmem [shape: f32[8,256], index: 0, kind: input, shape index: {}]   ;;  %s118_s1 = inlined_call_operand.vmem [shape: f32[8,1], index: 1, kind: input, shape index: {}]   ;;  %s119_s2 = inlined_call_operand.vmem [shape: f32[8,1], index: 2, kind: input, shape index: {}]   ;;  %s120_s3 = inlined_call_operand.hbm [shape: f32[8,256], index: 3, kind: output, shape index: {}]  }
   0x1   :  { %v17_v0 = vld [vmem:[%s118_s1] sm:$0xff] }
   0x2   :  { %8 = vsyncpa [#allocation3], 0  ;;  %v80_v1 = vmov 0   ;;  %v25_v2 = vld [vmem:[%s119_s2] sm:$0xff]  ;;  %v16_v5 = vld [vmem:[%s117_s0 + $0x8] sm:$0xff]  ;;  %s81_s1 = smov [#allocation2]  }
   0x3   :  { %53 = vset.pattern.permute.xlu0 %v80_v1  ;;  %v15_v4 = vld [vmem:[%s117_s0] sm:$0xff]  ;;  %s40_s20 = sshll.u32 %s81_s1, 4  ;;  %s42_s23 = sshll.u32 %s120_s3, 4  ;;  %s41_s20 = int_to_ptr.vmem [resolvable:$true] %s40_s20  ;;  %s43_s23 = int_to_ptr.hbm [resolvable:$true] %s42_s23 }
   0x4   :  { %20 = vperm.xlu0 %53, %v17_v0  }
   0xc   :  { %28 = vperm.xlu0 %53, %v25_v2  }
  0x76   :  { %v21_v3 = vpop.permute.xlu0 %20 }
  0x77   :  { %v23_v6 = vmul.f32 %v21_v3, %v15_v4  ;;  %v24_v7 = vmul.f32 %v21_v3, %v16_v5 }
  0x7e   :  { %v29_v8 = vpop.permute.xlu0 %28 }
  0x7f   :  { %v31_v9 = vadd.f32 %v29_v8, %v23_v6  ;;  %v32_v10 = vadd.f32 %v29_v8, %v24_v7 }
  0x81   :  { %33 = vst [vmem:[#allocation2] sm:$0xff] %v31_v9 }
  0x82   :  { %34 = vst [vmem:[#allocation2 + $0x8] sm:$0xff] %v32_v10 }
  0x83   :  { %45 = dma.vmem_to_hbm [thread:$0]  %s41_s20, 256, %s43_s23, [#allocation3]  }
  0x84   :  { %78 = dma.done.wait [#allocation3], 256  }
  0x85   :  { %79 = vsyncadd [#allocation3], 4294967040 }
  0x86   :  { %50 = vsyncpa [#allocation3], 1 }

</bundles_post_ra>
